<compile_context>
chip_gen: v5e
topology: v5e:2x2
jax: 0.10.0
libtpu: 0.0.40
codegen_flags: <defaults>
</compile_context>

<pallas_src>
import functools

import jax
import jax.numpy as jnp
import numpy as np
from jax import lax
from jax.experimental import pallas as pl
from jax.experimental.pallas import tpu as pltpu


def _round_up(x, m):
    return (x + m - 1) // m * m


def _upsample_block_kernel(x_ref, w_ref, b_ref, a_ref, o_ref, *, Wp, TL, Cp):
    """One (batch n, lane-chunk j) grid step.

    x_ref: (1, 1, Cp, TLh) bf16  zero-padded flat image chunk (+halo); channels on sublanes
    w_ref: (2C, 9*Cp)      bf16  fused (tconv ∘ conv) weight; rows [0:C) even, [C:2C) odd out rows
    b_ref: (2C, 1)         f32   fused bias
    a_ref: (1,)            f32   PReLU slope (SMEM scalar)
    o_ref: (1, 2C, TL)     f32   lane-dense output chunk (TL % 128 == 0)
    """
    x = x_ref[0, 0]                                          # single (Cp, TLh) VMEM load
    # im2col: 9 statically shifted views stacked along sublanes -> (9*Cp, TL), bf16
    taps = [x[:, kh * Wp + kw: kh * Wp + kw + TL]
            for kh in range(3) for kw in range(3)]
    p = jnp.concatenate(taps, axis=0)

    # One fused bf16 MXU matmul (f32 accumulate) replaces conv + tconv.
    acc = jnp.dot(w_ref[...], p, preferred_element_type=jnp.float32)   # (2C, TL) f32
    acc = acc + b_ref[...]                                             # bias (lane-broadcast)
    a = a_ref[0]                                                       # SMEM scalar
    o_ref[0] = jnp.where(acc > 0.0, acc, a * acc)                      # PReLU, lane-dense store


@jax.jit
def upsample_block_forward(x_nchw, conv_w, conv_b, up_w, prelu_a):
    """x_nchw: (N, C, H, W) f32. Returns (N, C, 2H, W) f32 (NCHW, like PyTorch)."""
    N, C, H, W = x_nchw.shape
    C2 = 2 * C
    Cp = _round_up(C, 8)                  # sublane-pad channels
    Wp = W + 2                            # width incl. conv padding (2 junk cols/row in output)
    Lp = (H + 2) * Wp                     # flattened padded-image length
    L = H * Wp                            # flattened output-grid length (incl. junk cols)

    # ---- lane chunking: bound per-step VMEM and feed both v7x TCs even at N=1 ----
    n_chunks = max(1, (L + 4095) // 4096)
    if N * n_chunks < 2 and L > 128:
        n_chunks = 2
    TL = _round_up((L + n_chunks - 1) // n_chunks, 128)   # output lanes per chunk (128-aligned)
    Lout = n_chunks * TL                                  # 128-aligned output lanes per image
    halo = 2 * Wp + 2                                     # max im2col shift (kh=2, kw=2)
    TLh = _round_up(TL + halo, 128)                       # input lanes per chunk (incl. halo)
    Lin = (n_chunks - 1) * TL + TLh                       # total padded input lanes per image

    # ---- glue (plain JAX, fused by XLA): zero-pad, flatten, chunk (+halo), bf16 ----
    x_pad = jnp.pad(x_nchw.astype(jnp.float32),
                    ((0, 0), (0, Cp - C), (1, 1), (1, 1)))             # (N, Cp, H+2, Wp)
    x_lin = jnp.pad(x_pad.reshape(N, Cp, Lp),
                    ((0, 0), (0, 0), (0, Lin - Lp))).astype(jnp.bfloat16)
    # (N, n_chunks, Cp, TLh): static overlapping slices -> kernel needs no dynamic lane slicing.
    x_chunks = jnp.stack([x_lin[:, :, j * TL: j * TL + TLh] for j in range(n_chunks)], axis=1)

    # ---- precompose conv(3x3,+bias) with the stride-(2,1) tconv (both linear); f32 -> bf16 ----
    wc = jnp.transpose(conv_w.astype(jnp.float32), (0, 2, 3, 1)).reshape(C2, 9, C)   # [o, kk, i]
    wc = jnp.pad(wc, ((0, 0), (0, 0), (0, Cp - C)))                                  # [o, kk, ip]
    wt = up_w[:, :, :, 0].astype(jnp.float32)                                        # [o, c, k]
    w_f = jnp.einsum("ock,onp->kcnp", wt, wc).reshape(C2, 9 * Cp).astype(jnp.bfloat16)
    b_f = jnp.einsum("ock,o->kc", wt, conv_b.astype(jnp.float32)).reshape(C2, 1)
    a_k = prelu_a.reshape(1).astype(jnp.float32)

    kernel = functools.partial(_upsample_block_kernel, Wp=Wp, TL=TL, Cp=Cp)

    out = pl.pallas_call(
        kernel,
        out_shape=jax.ShapeDtypeStruct((N, C2, Lout), jnp.float32),
        grid=(N, n_chunks),
        in_specs=[
            pl.BlockSpec((1, 1, Cp, TLh), lambda n, j: (n, j, 0, 0)),
            pl.BlockSpec((C2, 9 * Cp), lambda n, j: (0, 0)),
            pl.BlockSpec((C2, 1), lambda n, j: (0, 0)),
            pl.BlockSpec(memory_space=pltpu.MemorySpace.SMEM),
        ],
        out_specs=pl.BlockSpec((1, C2, TL), lambda n, j: (n, 0, j)),
        compiler_params=pltpu.CompilerParams(
            dimension_semantics=("parallel", "parallel"),
            # Chunking keeps the per-step working set small; a modest raise still helps
            # v6e/v5e at large images and stays under v7x's 64 MiB physical VMEM.
            vmem_limit_bytes=48 * 1024 * 1024),
    )(x_chunks, w_f, b_f, a_k)

    # ---- glue: drop junk width-pad cols, interleave even/odd rows, back to NCHW ----
    out = out[:, :, :L].reshape(N, 2, C, H, Wp)[:, :, :, :, :W]        # (N, 2, C, H, W)
    out = jnp.transpose(out, (0, 2, 3, 1, 4)).reshape(N, C, 2 * H, W)
    return out


def reference_forward(x, conv_w, conv_b, up_w, prelu_a):
    """Pure-JAX f32 reference matching PyTorch semantics (NCHW)."""
    y = lax.conv_general_dilated(
        x, conv_w, window_strides=(1, 1), padding=((1, 1), (1, 1)),
        dimension_numbers=("NCHW", "OIHW", "NCHW"))
    y = y + conv_b[None, :, None, None]
    # ConvTranspose2d k=(2,1), s=(2,1): out[:, :, 2h+k, w] = sum_i y[:, i, h, w] * W[i, :, k, 0]
    o0 = jnp.einsum("nihw,io->nohw", y, up_w[:, :, 0, 0])
    o1 = jnp.einsum("nihw,io->nohw", y, up_w[:, :, 1, 0])
    N, Co, H, W = o0.shape
    out = jnp.stack([o0, o1], axis=3).reshape(N, Co, 2 * H, W)
    return jnp.where(out > 0, out, prelu_a * out)


if __name__ == "__main__":
    key = jax.random.PRNGKey(0)
    k1, k2, k3, k4, k5 = jax.random.split(key, 5)

    N, C, H, W = 2, 4, 16, 16
    x = jax.random.normal(k1, (N, C, H, W), jnp.float32)
    conv_w = jax.random.normal(k2, (2 * C, C, 3, 3), jnp.float32) * 0.1   # Conv2d weight (OIHW)
    conv_b = jax.random.normal(k3, (2 * C,), jnp.float32) * 0.1           # Conv2d bias
    up_w = jax.random.normal(k4, (2 * C, C, 2, 1), jnp.float32) * 0.1     # ConvTranspose2d weight (IOHW)
    prelu_a = jnp.array([0.25], jnp.float32)                              # PReLU default init

    out = jax.block_until_ready(upsample_block_forward(x, conv_w, conv_b, up_w, prelu_a))
    ref = reference_forward(x, conv_w, conv_b, up_w, prelu_a)
    assert out.shape == (N, C, 2 * H, W)
    # bf16 MXU operands with f32 accumulate -> slightly looser tolerance than pure f32.
    np.testing.assert_allclose(np.asarray(out), np.asarray(ref), atol=2e-2, rtol=2e-2)

    # Also exercise the lane-chunked grid path (N=1 -> n_chunks=2, grid=(1,2)).
    x1 = jax.random.normal(k5, (1, C, H, W), jnp.float32)
    out1 = jax.block_until_ready(upsample_block_forward(x1, conv_w, conv_b, up_w, prelu_a))
    ref1 = reference_forward(x1, conv_w, conv_b, up_w, prelu_a)
    np.testing.assert_allclose(np.asarray(out1), np.asarray(ref1), atol=2e-2, rtol=2e-2)

    print("KERNEL_OK")
</pallas_src>

<mosaic_0001>
module attributes {stable_mosaic.version = 11 : i64} {
  func.func @_upsample_block_kernel(%arg0: i32, %arg1: i32, %arg2: memref<1x1x8x512xbf16, #tpu.memory_space<vmem>>, %arg3: memref<8x72xbf16, #tpu.memory_space<vmem>>, %arg4: memref<8x1xf32, #tpu.memory_space<vmem>>, %arg5: memref<1xf32, #tpu.memory_space<smem>>, %arg6: memref<1x8x384xf32, #tpu.memory_space<vmem>>) attributes {dimension_semantics = [#tpu.dimension_semantics<parallel>, #tpu.dimension_semantics<parallel>], iteration_bounds = array<i64: 2, 1>, scalar_prefetch = 0 : i64, scratch_operands = 0 : i64, tpu.core_type = #tpu.core_type<tc>, window_params = [{transform_indices = @transform_0, window_bounds = array<i64: 1, 1, 8, 512>}, {pipeline_mode = #tpu.pipeline_mode<synchronous>, transform_indices = @transform_1, window_bounds = array<i64: 8, 72>}, {pipeline_mode = #tpu.pipeline_mode<synchronous>, transform_indices = @transform_2, window_bounds = array<i64: 8, 1>}, {transform_indices = @transform_3, window_bounds = array<i64: 1>}, {transform_indices = @transform_4, window_bounds = array<i64: 1, 8, 384>}]} {
    %c0 = arith.constant 0 : index
    %c0_0 = arith.constant 0 : index
    %c0_1 = arith.constant 0 : index
    %c0_2 = arith.constant 0 : index
    %0 = vector.load %arg2[%c0, %c0_0, %c0_1, %c0_2] : memref<1x1x8x512xbf16, #tpu.memory_space<vmem>>, vector<1x1x8x512xbf16>
    %1 = vector.shape_cast %0 : vector<1x1x8x512xbf16> to vector<8x512xbf16>
    %2 = vector.extract_strided_slice %1 {offsets = [0, 0], sizes = [8, 384], strides = [1, 1]} : vector<8x512xbf16> to vector<8x384xbf16>
    %3 = vector.extract_strided_slice %1 {offsets = [0, 1], sizes = [8, 384], strides = [1, 1]} : vector<8x512xbf16> to vector<8x384xbf16>
    %4 = vector.extract_strided_slice %1 {offsets = [0, 2], sizes = [8, 384], strides = [1, 1]} : vector<8x512xbf16> to vector<8x384xbf16>
    %5 = vector.extract_strided_slice %1 {offsets = [0, 18], sizes = [8, 384], strides = [1, 1]} : vector<8x512xbf16> to vector<8x384xbf16>
    %6 = vector.extract_strided_slice %1 {offsets = [0, 19], sizes = [8, 384], strides = [1, 1]} : vector<8x512xbf16> to vector<8x384xbf16>
    %7 = vector.extract_strided_slice %1 {offsets = [0, 20], sizes = [8, 384], strides = [1, 1]} : vector<8x512xbf16> to vector<8x384xbf16>
    %8 = vector.extract_strided_slice %1 {offsets = [0, 36], sizes = [8, 384], strides = [1, 1]} : vector<8x512xbf16> to vector<8x384xbf16>
    %9 = vector.extract_strided_slice %1 {offsets = [0, 37], sizes = [8, 384], strides = [1, 1]} : vector<8x512xbf16> to vector<8x384xbf16>
    %10 = vector.extract_strided_slice %1 {offsets = [0, 38], sizes = [8, 384], strides = [1, 1]} : vector<8x512xbf16> to vector<8x384xbf16>
    %11 = tpu.concatenate %2, %3, %4, %5, %6, %7, %8, %9, %10 in 0 : vector<8x384xbf16>, vector<8x384xbf16>, vector<8x384xbf16>, vector<8x384xbf16>, vector<8x384xbf16>, vector<8x384xbf16>, vector<8x384xbf16>, vector<8x384xbf16>, vector<8x384xbf16> -> vector<72x384xbf16>
    %c0_3 = arith.constant 0 : index
    %c0_4 = arith.constant 0 : index
    %12 = vector.load %arg3[%c0_3, %c0_4] : memref<8x72xbf16, #tpu.memory_space<vmem>>, vector<8x72xbf16>
    %cst = arith.constant dense<0.000000e+00> : vector<8x384xf32>
    %13 = tpu.matmul %12, %11, %cst {dimension_numbers = #tpu.dot_dimension_numbers<[1], [0], [0], [1], [0, 0, 1, 1], [], []>} : vector<8x72xbf16>, vector<72x384xbf16>, vector<8x384xf32> -> vector<8x384xf32>
    %c0_5 = arith.constant 0 : index
    %c0_6 = arith.constant 0 : index
    %14 = vector.load %arg4[%c0_5, %c0_6] : memref<8x1xf32, #tpu.memory_space<vmem>>, vector<8x1xf32>
    %15 = vector.broadcast %14 : vector<8x1xf32> to vector<8x384xf32>
    %16 = arith.addf %13, %15 : vector<8x384xf32>
    %c0_7 = arith.constant 0 : index
    %17 = memref.load %arg5[%c0_7] : memref<1xf32, #tpu.memory_space<smem>>
    %cst_8 = arith.constant 0.000000e+00 : f32
    %18 = vector.broadcast %cst_8 : f32 to vector<8x384xf32>
    %19 = arith.cmpf ogt, %16, %18 : vector<8x384xf32>
    %20 = vector.broadcast %17 : f32 to vector<8x384xf32>
    %21 = arith.mulf %20, %16 : vector<8x384xf32>
    %22 = arith.select %19, %16, %21 : vector<8x384xi1>, vector<8x384xf32>
    %c0_9 = arith.constant 0 : index
    %c0_10 = arith.constant 0 : index
    %c0_11 = arith.constant 0 : index
    %23 = vector.load %arg6[%c0_9, %c0_10, %c0_11] : memref<1x8x384xf32, #tpu.memory_space<vmem>>, vector<1x8x384xf32>
    %24 = vector.shape_cast %23 : vector<1x8x384xf32> to vector<8x384xf32>
    %25 = vector.shape_cast %22 : vector<8x384xf32> to vector<1x8x384xf32>
    tpu.vector_store %arg6[%c0_9, %c0_10, %c0_11], %25 {strides = array<i32>} : memref<1x8x384xf32, #tpu.memory_space<vmem>>, vector<1x8x384xf32>,
    return
  }
  func.func @transform_0(%arg0: i32, %arg1: i32) -> (i32, i32, i32, i32) {
    %c0_i32 = arith.constant 0 : i32
    %c0_i32_0 = arith.constant 0 : i32
    %c0_i32_1 = arith.constant 0 : i32
    return %arg0, %arg1, %c0_i32, %c0_i32_0 : i32, i32, i32, i32
  }
  func.func @transform_1(%arg0: i32, %arg1: i32) -> (i32, i32) {
    %c0_i32 = arith.constant 0 : i32
    %c0_i32_0 = arith.constant 0 : i32
    %c0_i32_1 = arith.constant 0 : i32
    return %c0_i32, %c0_i32_0 : i32, i32
  }
  func.func @transform_2(%arg0: i32, %arg1: i32) -> (i32, i32) {
    %c0_i32 = arith.constant 0 : i32
    %c0_i32_0 = arith.constant 0 : i32
    %c0_i32_1 = arith.constant 0 : i32
    return %c0_i32, %c0_i32_0 : i32, i32
  }
  func.func @transform_3(%arg0: i32, %arg1: i32) -> i32 {
    %c0_i32 = arith.constant 0 : i32
    %c0_i32_0 = arith.constant 0 : i32
    return %c0_i32 : i32
  }
  func.func @transform_4(%arg0: i32, %arg1: i32) -> (i32, i32, i32) {
    %c0_i32 = arith.constant 0 : i32
    %c0_i32_0 = arith.constant 0 : i32
    return %arg0, %c0_i32, %arg1 : i32, i32, i32
  }
}

</mosaic_0001>

<bundles_post_ra>
// kernel: upsample_block_forward.1
= control target key start
LH: loop header
LB: loop body
LE: loop exit
PB: predicated region body
PF: predicated region fallthrough
CT: control target
= control target key end

     0   :  { %s668_s17 = smov 0   ;;  %s670_s18 = smov 0   ;;  %s794_s0 = inlined_call_operand.vmem [shape: bf16[2,1,8,512], index: 0, kind: input, shape index: {}]   ;;  %s795_s1 = inlined_call_operand.vmem [shape: bf16[8,72], index: 1, kind: input, shape index: {}]   ;;  %s796_s2 = inlined_call_operand.vmem [shape: f32[8,1], index: 2, kind: input, shape index: {}]   ;;  %s797_s3 = inlined_call_operand.<no memory space> [shape: f32[1], index: 3, kind: input, shape index: {}]   ;;  %s798_s4 = inlined_call_operand.vmem [shape: f32[2,8,384], index: 4, kind: output, shape index: {}]  }
   0x1   :  { %9 = sst [smem:[#allocation2]] %s797_s3  ;;  %s672_s19 = smov 0  }
   0x2 LB: > { %s27_s3 = sadd.s32 1, %s625_s18  ;;  %p561_p0 = scmp.ge.s32.totalorder %s629_s19, 1  ;;  %s629_s19 = sphi %s672_s19, %s15_s19   ;;  %s625_s18 = sphi %s670_s18, %s800_s18   ;;  %s621_s17 = sphi %s668_s17, %s799_s17  }
   0x3   : > { %p29_p1 = scmp.ge.s32.totalorder %s27_s3, 2  ;;  %p183_p2 = scmp.lt.s32.totalorder %s629_s19, 3 }
   0x5   : > { %s802_s3 = smov (%p29_p1, %s27_s3), 0  ;;  %p184_p3 = pnand %p561_p0, %p183_p2 }
   0x6   : > { %p217_p4 = scmp.lt.s32.totalorder (!%p184_p3), %s621_s17, 1  ;;  %s631_s24 = smov (!%p184_p3), 91  }
   0x7   : > { %187 = sbr.rel (%p184_p3) target bundleno = 355 (0x163), region = 36  ;;  %s632_s25 = smov (!%p184_p3), 92  }
   0x8   : > { %s633_s26 = smov (!%p184_p3), 90   ;;  %s634_s27 = smov (!%p184_p3), 109  }
   0x9   : > { %s635_s28 = smov (!%p184_p3), 108   ;;  %s636_s29 = smov (!%p184_p3), 126  }
   0xa   : > { %s637_s30 = smov (!%p184_p3), 110   ;;  %s638_s5 = smov (!%p184_p3), 127  }
   0xb   : > { %s453_s10 = sld [smem:[#allocation2]] (!%p184_p3) }
   0xc   : > { %s804_s17 = smov (!%p217_p4, %s621_s17), 1  ;;  %vm341_vm0 = vcmask 736256   ;;  %vm345_vm1 = vcmask 1043456   ;;  %vm317_vm2 = vcmask 752640   ;;  %vm329_vm3 = vcmask 744448   ;;  %v395_v53 = vld [vmem:[%s796_s2] sm:$0xff] }
   0xd   : > { %s570_s20 = sshll.u32 %s804_s17, 4  ;;  %vm305_vm4 = vcmask 883712   ;;  %vm293_vm5 = vcmask 891904   ;;  %vm269_vm6 = vcmask 1031168   ;;  %vm281_vm7 = vcmask 900096   ;;  %s571_s11 = smul.u32 24, %s804_s17 }
   0xe   : > { %s225_s23 = scalar_lea.vmem %s794_s0, %s570_s20  ;;  %v639_v55 = vmov 0   ;;  %vm257_vm8 = vcmask 1039360   ;;  %vm401_vm9 = vcmask 588800  }
   0xf   : > { %v238_v0 = vld [vmem:[%s225_s23 + $0x8] sm:$0xff]  ;;  %v237_v5 = vld [vmem:[%s225_s23] sm:$0xff]  ;;  %605 = vset.pattern.permute.xlu2 %v639_v55  ;;  %606 = vset.pattern.permute.xlu0 %v639_v55  ;;  %s234_s14 = scalar_lea.vmem %s798_s4, %s571_s11 }
  0x10   : > { %v243_v1 = vunpack.c.l.b16 %v238_v0  ;;  %v247_v3 = vunpack.c.h.b16 %v238_v0  ;;  %v242_v6 = vunpack.c.h.b16 %v237_v5  ;;  %v241_v7 = vunpack.c.l.b16 %v237_v5  ;;  %v394_v5 = vld [vmem:[%s795_s1] sm:$0xf] }
  0x12   : > { %v692_v2 = vpack.c.b16 %v243_v1, %v243_v1  ;;  %v248_v4 = vpack.c.b16 %v247_v3, %v247_v3  ;;  %v699_v8 = vpack.c.b16 %v242_v6, %v242_v6  ;;  %v701_v9 = vpack.c.b16 %v241_v7, %v241_v7 }
  0x14   : > { %325 = vrot.lane.b32.xlu2 %v692_v2, %s631_s24  ;;  %313 = vrot.lane.b32.xlu1 %v692_v2, %s632_s25 }
  0x15   : > { %337 = vrot.lane.b32.xlu0 %v692_v2, %s633_s26 }
  0x1c   : > { %327 = vrot.lane.b32.xlu2 %v248_v4, %s631_s24  ;;  %315 = vrot.lane.b32.xlu1 %v248_v4, %s632_s25 }
  0x1d   : > { %339 = vrot.lane.b32.xlu0 %v248_v4, %s633_s26 }
  0x24   : > { %289 = vrot.lane.b32.xlu2 %v692_v2, %s634_s27  ;;  %335 = vrot.lane.b32.xlu1 %v699_v8, %s633_s26 }
  0x25   : > { %333 = vrot.lane.b32.xlu0 %v701_v9, %s633_s26 }
  0x2c   : > { %303 = vrot.lane.b32.xlu2 %v248_v4, %s635_s28  ;;  %301 = vrot.lane.b32.xlu1 %v692_v2, %s635_s28 }
  0x2d   : > { %291 = vrot.lane.b32.xlu0 %v248_v4, %s634_s27 }
  0x34   : > { %311 = vrot.lane.b32.xlu1 %v699_v8, %s632_s25  ;;  %321 = vrot.lane.b32.xlu2 %v701_v9, %s631_s24 }
  0x35   : > { %309 = vrot.lane.b32.xlu0 %v701_v9, %s632_s25 }
  0x3c   : > { %265 = vrot.lane.b32.xlu1 %v692_v2, %s636_s29  ;;  %267 = vrot.lane.b32.xlu2 %v248_v4, %s636_s29 }
  0x3d   : > { %323 = vrot.lane.b32.xlu0 %v699_v8, %s631_s24 }
  0x44   : > { %279 = vrot.lane.b32.xlu1 %v248_v4, %s637_s30  ;;  %285 = vrot.lane.b32.xlu2 %v701_v9, %s634_s27 }
  0x45   : > { %277 = vrot.lane.b32.xlu0 %v692_v2, %s637_s30 }
  0x4c   : > { %297 = vrot.lane.b32.xlu1 %v701_v9, %s635_s28  ;;  %299 = vrot.lane.b32.xlu2 %v699_v8, %s635_s28 }
  0x4d   : > { %287 = vrot.lane.b32.xlu0 %v699_v8, %s634_s27 }
  0x54   : > { %255 = vrot.lane.b32.xlu1 %v248_v4, %s638_s5  ;;  %261 = vrot.lane.b32.xlu2 %v701_v9, %s636_s29 }
  0x55   : > { %253 = vrot.lane.b32.xlu0 %v692_v2, %s638_s5 }
  0x5c   : > { %273 = vrot.lane.b32.xlu1 %v701_v9, %s637_s30  ;;  %275 = vrot.lane.b32.xlu2 %v699_v8, %s637_s30 }
  0x5d   : > { %263 = vrot.lane.b32.xlu0 %v699_v8, %s636_s29 }
  0x64   : > { %251 = vrot.lane.b32.xlu1 %v699_v8, %s638_s5  ;;  %398 = vperm.xlu2 %605, %v395_v53  }
  0x65   : > { %249 = vrot.lane.b32.xlu0 %v701_v9, %s638_s5 }
  0x6e   : > { %v326_v10 = vpop.permute.xlu2 %325 }
  0x76   : > { %v328_v11 = vpop.permute.xlu2 %327 }
  0x77   : > { %v332_v21 = vsel %vm329_vm3, %v326_v10, %v328_v11 }
  0x7e   : > { %v726_v13 = vpop.permute.xlu2 %289 }
  0x86   : > { %v314_v12 = vpop.permute.xlu1 %313  ;;  %v304_v18 = vpop.permute.xlu2 %303 }
  0x87   : > { %v338_v14 = vpop.permute.xlu0 %337 }
  0x8e   : > { %v316_v15 = vpop.permute.xlu1 %315  ;;  %v322_v29 = vpop.permute.xlu2 %321 }
  0x8f   : > { %v340_v16 = vpop.permute.xlu0 %339  ;;  %v320_v20 = vsel %vm317_vm2, %v314_v12, %v316_v15 }
  0x90   : > { %v344_v17 = vsel %vm341_vm0, %v338_v14, %v340_v16  ;;  %v392_v22 = vsel %vm345_vm1, %v320_v20, %v332_v21 }
  0x91   : > { %v412_v19 = vsel %vm345_vm1, %v344_v17, 0 }
  0x92   : > { %443 = vmatpush.bf16.msra.mxu2 %v412_v19 }
  0x96   : > { %444 = vmatpush.bf16.msra.mxu2 %v392_v22  ;;  %v336_v23 = vpop.permute.xlu1 %335  ;;  %v268_v35 = vpop.permute.xlu2 %267 }
  0x97   : > { %v334_v24 = vpop.permute.xlu0 %333  ;;  %v343_v25 = vsel %vm341_vm0, %v336_v23, %v338_v14 }
  0x98   : > { %v342_v26 = vsel %vm341_vm0, %v334_v24, %v336_v23  ;;  %v409_v27 = vsel %vm345_vm1, %v343_v25, 0  ;;  %v457_v24 = vstv %s453_s10 }
  0x99   : > { %v406_v28 = vsel %vm345_vm1, %v342_v26, 0  ;;  %430 = vmatpush.bf16.msra.mxu1 %v409_v27 }
  0x9a   : > { %417 = vmatpush.bf16.msra.mxu0 %v406_v28 }
  0x9e   : > { %v302_v30 = vpop.permute.xlu1 %301  ;;  %v286_v39 = vpop.permute.xlu2 %285 }
  0x9f   : > { %v308_v31 = vsel %vm305_vm4, %v302_v30, %v304_v18  ;;  %v292_v32 = vpop.permute.xlu0 %291 }
  0xa0   : > { %v296_v33 = vsel %vm293_vm5, %v726_v13, %v292_v32 }
  0xa1   : > { %v380_v34 = vsel %vm345_vm1, %v296_v33, %v308_v31 }
  0xa2   : > { %445 = vmatpush.bf16.msra.mxu2 %v380_v34 }
  0xa6   : > { %v312_v36 = vpop.permute.xlu1 %311  ;;  %v300_v51 = vpop.permute.xlu2 %299 }
  0xa7   : > { %v310_v37 = vpop.permute.xlu0 %309  ;;  %v319_v41 = vsel %vm317_vm2, %v312_v36, %v314_v12  ;;  %v307_v58 = vsel %vm305_vm4, %v300_v51, %v302_v30 }
  0xa8   : > { %v318_v42 = vsel %vm317_vm2, %v310_v37, %v312_v36 }
  0xae   : > { %v266_v38 = vpop.permute.xlu1 %265  ;;  %v262_v63 = vpop.permute.xlu2 %261 }
  0xaf   : > { %v324_v40 = vpop.permute.xlu0 %323  ;;  %v272_v49 = vsel %vm269_vm6, %v266_v38, %v268_v35 }
  0xb0   : > { %v330_v43 = vsel %vm329_vm3, %v322_v29, %v324_v40  ;;  %v331_v44 = vsel %vm329_vm3, %v324_v40, %v326_v10 }
  0xb1   : > { %v384_v45 = vsel %vm345_vm1, %v318_v42, %v330_v43  ;;  %v388_v46 = vsel %vm345_vm1, %v319_v41, %v331_v44 }
  0xb2   : > { %418 = vmatpush.bf16.msra.mxu0 %v384_v45  ;;  %431 = vmatpush.bf16.msra.mxu1 %v388_v46 }
  0xb6   : > { %v280_v47 = vpop.permute.xlu1 %279  ;;  %v276_v6 = vpop.permute.xlu2 %275 }
  0xb7   : > { %v278_v48 = vpop.permute.xlu0 %277 }
  0xb8   : > { %v284_v50 = vsel %vm281_vm7, %v278_v48, %v280_v47  ;;  %v283_v12 = vsel %vm281_vm7, %v276_v6, %v278_v48 }
  0xb9   : > { %v368_v52 = vsel %vm345_vm1, %v272_v49, %v284_v50 }
  0xba   : > { %446 = vmatpush.bf16.msra.mxu2 %v368_v52 }
  0xbe   : > { %v298_v54 = vpop.permute.xlu1 %297  ;;  %v399_v22 = vpop.permute.xlu2 %398 }
  0xbf   : > { %v306_v56 = vsel %vm305_vm4, %v298_v54, %v300_v51  ;;  %v288_v57 = vpop.permute.xlu0 %287 }
  0xc0   : > { %v294_v59 = vsel %vm293_vm5, %v286_v39, %v288_v57  ;;  %v295_v60 = vsel %vm293_vm5, %v288_v57, %v726_v13 }
  0xc1   : > { %v372_v61 = vsel %vm345_vm1, %v294_v59, %v306_v56  ;;  %v376_v62 = vsel %vm345_vm1, %v295_v60, %v307_v58 }
  0xc2   : > { %419 = vmatpush.bf16.msra.mxu0 %v372_v61  ;;  %432 = vmatpush.bf16.msra.mxu1 %v376_v62 }
  0xc6   : > { %v256_v0 = vpop.permute.xlu1 %255 }
  0xc7   : > { %v254_v1 = vpop.permute.xlu0 %253 }
  0xc8   : > { %v260_v3 = vsel %vm257_vm8, %v254_v1, %v256_v0 }
  0xc9   : > { %v356_v4 = vsel %vm345_vm1, %v692_v2, %v260_v3 }
  0xca   : > { %447 = vmatpush.bf16.msra.mxu2 %v356_v4 }
  0xcd   : > { %567 = vmatmul.msk.bf16.vlgmr.msra.gmra.mxu2 %vm401_vm9, %v394_v5 }
  0xce   : > { %v274_v7 = vpop.permute.xlu1 %273 }
  0xcf   : > { %v282_v10 = vsel %vm281_vm7, %v274_v7, %v276_v6  ;;  %v264_v11 = vpop.permute.xlu0 %263 }
  0xd0   : > { %v270_v13 = vsel %vm269_vm6, %v262_v63, %v264_v11  ;;  %v271_v14 = vsel %vm269_vm6, %v264_v11, %v266_v38 }
  0xd1   : > { %v360_v2 = vsel %vm345_vm1, %v270_v13, %v282_v10  ;;  %v364_v15 = vsel %vm345_vm1, %v271_v14, %v283_v12 }
  0xd2   : > { %420 = vmatpush.bf16.msra.mxu0 %v360_v2  ;;  %433 = vmatpush.bf16.msra.mxu1 %v364_v15 }
  0xd6   : > { %v252_v16 = vpop.permute.xlu1 %251 }
  0xd7   : > { %v259_v17 = vsel %vm257_vm8, %v252_v16, %v254_v1  ;;  %v250_v18 = vpop.permute.xlu0 %249 }
  0xd8   : > { %v258_v19 = vsel %vm257_vm8, %v250_v18, %v252_v16  ;;  %v352_v20 = vsel %vm345_vm1, %v699_v8, %v259_v17 }
  0xd9   : > { %v348_v21 = vsel %vm345_vm1, %v701_v9, %v258_v19  ;;  %434 = vmatpush.bf16.msra.mxu1 %v352_v20 }
  0xda   : > { %421 = vmatpush.bf16.msra.mxu0 %v348_v21 }
  0xdc   : > { %566 = vmatmul.msk.bf16.vlgmr.msra.gmra.mxu1 %vm401_vm9, %v394_v5 }
  0xdd   : > { %565 = vmatmul.msk.bf16.vlgmr.msra.gmra.mxu0 %vm401_vm9, %v394_v5 }
 0x150   : > { %v449_v23 = vpop.f32.mrf.mxu2 }
 0x151   : > { %v450_v25 = vadd.f32 %v449_v23, %v399_v22 }
 0x153   : > { %vm456_vm10 = vcmp.gt.f32.partialorder %v450_v25, 0.0  ;;  %v460_v8 = vmul.f32 %v457_v24, %v450_v25 }
 0x155   : > { %v463_v26 = vsel %vm456_vm10, %v450_v25, %v460_v8 }
 0x156   : > { %466 = vst [vmem:[%s234_s14 + $0x10] sm:$0xff] %v463_v26 }
 0x158   : > { %v451_v9 = vpop.f32.mrf.mxu2 }
 0x159   : > { %v436_v27 = vpop.f32.mrf.mxu1 }
 0x15a   : > { %v423_v28 = vpop.f32.mrf.mxu0  ;;  %v437_v29 = vadd.f32 %v436_v27, %v399_v22 }
 0x15b   : > { %v424_v30 = vadd.f32 %v423_v28, %v399_v22 }
 0x15c   : > { %vm455_vm11 = vcmp.gt.f32.partialorder %v437_v29, 0.0  ;;  %v459_v31 = vmul.f32 %v457_v24, %v437_v29 }
 0x15d   : > { %vm454_vm12 = vcmp.gt.f32.partialorder %v424_v30, 0.0  ;;  %v458_v32 = vmul.f32 %v457_v24, %v424_v30 }
 0x15e   : > { %v462_v33 = vsel %vm455_vm11, %v437_v29, %v459_v31 }
 0x15f   : > { %v461_v34 = vsel %vm454_vm12, %v424_v30, %v458_v32  ;;  %465 = vst [vmem:[%s234_s14 + $0x8] sm:$0xff] %v462_v33 }
 0x160   : > { %464 = vst [vmem:[%s234_s14] sm:$0xff] %v461_v34 }
 0x161   : > { %v438_v35 = vpop.f32.mrf.mxu1 }
 0x162   : > { %v425_v36 = vpop.f32.mrf.mxu0 }
 0x163 PF: > { %s15_s19 = sadd.s32 1, %s629_s19   ;;  %s799_s17 = smov %s625_s18 }
 0x164   : > { %p12_p5 = scmp.ge.s32.totalorder %s15_s19, 4   ;;  %s800_s18 = smov %s802_s3 }
 0x166   :  { %14 = sbr.rel (!%p12_p5) target bundleno = 2 (0x2), region = 66 }

</bundles_post_ra>
